<compile_context>
chip_gen: v5e
topology: v5e:2x2
jax: 0.10.0
libtpu: 0.0.40
codegen_flags: <defaults>
</compile_context>

<pallas_src>
import functools

import jax
import jax.numpy as jnp
from jax.experimental import pallas as pl
from jax.experimental.pallas import tpu as pltpu


def _cdiv(a, b):
    return -(-a // b)


def _round_up(a, b):
    return _cdiv(a, b) * b


def _to_slab(x, rows, lane):
    """Flatten x and zero-pad it into a lane-dense (rows, lane) slab."""
    flat = x.reshape(-1)
    flat = jnp.pad(flat, (0, rows * lane - flat.shape[0]))
    return flat.reshape(rows, lane)


def _loss_kernel(w_ref, fp_ref, ft_ref, ep_ref, et_ref, out_ref, *,
                 inv_n_force, inv_n_energy):
    """Grid = (n_split, n_blocks).

    Axis 0 ("parallel") shards the force-row sweep (dual TC on v7x); axis 1
    ("arbitrary") is the reduction over force blocks. The (8, lane) output
    block is revisited across axis 1 and acts as a resident vector
    accumulator: per step only VPU adds, no XLU reduce, no SMEM scalar store.
    """
    c = pl.program_id(0)
    i = pl.program_id(1)
    last = pl.num_programs(1) - 1
    lane = out_ref.shape[-1]

    @pl.when(i == 0)
    def _():
        out_ref[...] = jnp.zeros_like(out_ref)

    # Force squared error for this block, reduced only along the leading
    # (vreg-index) axis -> elementwise vreg adds on the VPU.
    fd = fp_ref[...].astype(jnp.float32) - ft_ref[...].astype(jnp.float32)
    sq = fd * fd
    out_ref[...] = out_ref[...] + jnp.sum(sq.reshape(-1, 8, lane), axis=0)

    # Finalize this split's partial: scale by w_force / n_force.
    @pl.when(i == last)
    def _():
        out_ref[...] = out_ref[...] * (w_ref[0] * jnp.float32(inv_n_force))

    # Split 0 additionally folds in the weighted energy MSE (tiny, lane-dense).
    @pl.when(jnp.logical_and(i == last, c == 0))
    def _():
        ed = ep_ref[...].astype(jnp.float32) - et_ref[...].astype(jnp.float32)
        esq = ed * ed
        out_ref[...] = out_ref[...] + (
            w_ref[1] * jnp.float32(inv_n_energy)
        ) * jnp.sum(esq.reshape(-1, 8, lane), axis=0)


def combined_loss(weights, f_pred, f_targ, e_pred, e_targ, *,
                  lane=512, target_block_rows=1024, n_split=2):
    """Weighted sum of force-MSE and energy-MSE via one Pallas kernel."""
    n_atoms, ncart = f_pred.shape
    n_force = n_atoms * ncart
    n_energy = e_pred.size

    # --- lane-dense force slab + tiling ---------------------------------
    target_block_rows = max(8, (target_block_rows // 8) * 8)
    rows = _cdiv(n_force, lane)
    rows_per_split = _cdiv(rows, n_split)
    block_rows = min(target_block_rows, _round_up(rows_per_split, 8))
    nb = _cdiv(rows_per_split, block_rows)          # force blocks per split
    rows_padded = n_split * nb * block_rows

    # --- lane-dense energy slab (resident, used once on the last step) ---
    e_rows = _round_up(max(1, _cdiv(n_energy, lane)), 8)

    fp = _to_slab(f_pred, rows_padded, lane)
    ft = _to_slab(f_targ, rows_padded, lane)
    ep = _to_slab(e_pred, e_rows, lane)
    et = _to_slab(e_targ, e_rows, lane)

    kernel = functools.partial(
        _loss_kernel,
        inv_n_force=1.0 / n_force,
        inv_n_energy=1.0 / n_energy,
    )

    partials = pl.pallas_call(
        kernel,
        out_shape=jax.ShapeDtypeStruct((n_split * 8, lane), jnp.float32),
        grid_spec=pltpu.PrefetchScalarGridSpec(
            num_scalar_prefetch=0,
            grid=(n_split, nb),
            in_specs=[
                # weights live in SMEM (tiny scalar vector)
                pl.BlockSpec(memory_space=pltpu.SMEM),
                # force slabs: ~2 MiB lane-dense blocks marching down the rows
                pl.BlockSpec((block_rows, lane), lambda c, i: (c * nb + i, 0)),
                pl.BlockSpec((block_rows, lane), lambda c, i: (c * nb + i, 0)),
                # energy slabs: small, resident (constant block index)
                pl.BlockSpec((e_rows, lane), lambda c, i: (0, 0)),
                pl.BlockSpec((e_rows, lane), lambda c, i: (0, 0)),
            ],
            # per-split weighted partial-sum tile, revisited across axis 1
            out_specs=pl.BlockSpec((8, lane), lambda c, i: (c, 0)),
        ),
        compiler_params=pltpu.CompilerParams(
            dimension_semantics=("parallel", "arbitrary"),
        ),
    )(weights.astype(jnp.float32), fp, ft, ep, et)

    # Single tiny cross-lane reduce of the already-weighted partials.
    return jnp.sum(partials)


def reference_loss(weights, f_pred, f_targ, e_pred, e_targ):
    """Pure-JAX reference mirroring the PyTorch Loss.forward semantics."""
    force_mse = jnp.mean((f_pred - f_targ) ** 2)
    energy_mse = jnp.mean((e_pred - e_targ) ** 2)
    per_loss = jnp.stack([force_mse, energy_mse]) * weights
    return per_loss.sum()


if __name__ == "__main__":
    key = jax.random.PRNGKey(0)
    k1, k2, k3, k4 = jax.random.split(key, 4)

    n_atoms, ncart = 256, 3   # (n_atoms, 3) predicted / target forces
    n_frames = 8              # (n_frames, 1) predicted / target energies

    f_pred = jax.random.normal(k1, (n_atoms, ncart), dtype=jnp.float32)
    f_targ = jax.random.normal(k2, (n_atoms, ncart), dtype=jnp.float32)
    e_pred = jax.random.normal(k3, (n_frames, 1), dtype=jnp.float32)
    e_targ = jax.random.normal(k4, (n_frames, 1), dtype=jnp.float32)

    # Deterministic sub-loss weights (register_buffer 'weights' in the module).
    weights = jnp.array([1.0, 0.5], dtype=jnp.float32)

    out = jax.jit(combined_loss)(weights, f_pred, f_targ, e_pred, e_targ)
    out = jax.block_until_ready(out)

    ref = reference_loss(weights, f_pred, f_targ, e_pred, e_targ)
    assert jnp.allclose(out, ref, rtol=1e-5, atol=1e-5), (out, ref)

    print("KERNEL_OK")
</pallas_src>

<mosaic_0001>
module attributes {stable_mosaic.version = 11 : i64} {
  func.func @_loss_kernel(%arg0: i32, %arg1: i32, %arg2: memref<2xf32, #tpu.memory_space<smem>>, %arg3: memref<8x512xf32, #tpu.memory_space<vmem>>, %arg4: memref<8x512xf32, #tpu.memory_space<vmem>>, %arg5: memref<8x512xf32, #tpu.memory_space<vmem>>, %arg6: memref<8x512xf32, #tpu.memory_space<vmem>>, %arg7: memref<8x512xf32, #tpu.memory_space<vmem>>) attributes {dimension_semantics = [#tpu.dimension_semantics<parallel>, #tpu.dimension_semantics<arbitrary>], iteration_bounds = array<i64: 2, 1>, scalar_prefetch = 0 : i64, scratch_operands = 0 : i64, tpu.core_type = #tpu.core_type<tc>, window_params = [{transform_indices = @transform_0, window_bounds = array<i64: 2>}, {transform_indices = @transform_1, window_bounds = array<i64: 8, 512>}, {transform_indices = @transform_2, window_bounds = array<i64: 8, 512>}, {pipeline_mode = #tpu.pipeline_mode<synchronous>, transform_indices = @transform_3, window_bounds = array<i64: 8, 512>}, {pipeline_mode = #tpu.pipeline_mode<synchronous>, transform_indices = @transform_4, window_bounds = array<i64: 8, 512>}, {transform_indices = @transform_5, window_bounds = array<i64: 8, 512>}]} {
    %c0_i32 = arith.constant 0 : i32
    %0 = arith.cmpi eq, %arg1, %c0_i32 : i32
    %1 = arith.extui %0 : i1 to i32
    %c0_i32_0 = arith.constant 0 : i32
    %2 = arith.cmpi ne, %1, %c0_i32_0 : i32
    scf.if %2 {
      %cst_13 = arith.constant 0.000000e+00 : f32
      %20 = vector.broadcast %cst_13 : f32 to vector<8x512xf32>
      %c0_14 = arith.constant 0 : index
      %c0_15 = arith.constant 0 : index
      %21 = vector.load %arg7[%c0_14, %c0_15] : memref<8x512xf32, #tpu.memory_space<vmem>>, vector<8x512xf32>
      tpu.vector_store %arg7[%c0_14, %c0_15], %20 {strides = array<i32>} : memref<8x512xf32, #tpu.memory_space<vmem>>, vector<8x512xf32>,
    } else {
    }
    %c0 = arith.constant 0 : index
    %c0_1 = arith.constant 0 : index
    %3 = vector.load %arg3[%c0, %c0_1] : memref<8x512xf32, #tpu.memory_space<vmem>>, vector<8x512xf32>
    %c0_2 = arith.constant 0 : index
    %c0_3 = arith.constant 0 : index
    %4 = vector.load %arg4[%c0_2, %c0_3] : memref<8x512xf32, #tpu.memory_space<vmem>>, vector<8x512xf32>
    %5 = arith.subf %3, %4 : vector<8x512xf32>
    %6 = arith.mulf %5, %5 : vector<8x512xf32>
    %c0_4 = arith.constant 0 : index
    %c0_5 = arith.constant 0 : index
    %7 = vector.load %arg7[%c0_4, %c0_5] : memref<8x512xf32, #tpu.memory_space<vmem>>, vector<8x512xf32>
    %8 = vector.shape_cast %6 : vector<8x512xf32> to vector<1x8x512xf32>
    %cst = arith.constant dense<0.000000e+00> : vector<8x512xf32>
    %9 = vector.multi_reduction <add>, %8, %cst [0] : vector<1x8x512xf32> to vector<8x512xf32>
    %10 = arith.addf %7, %9 : vector<8x512xf32>
    %c0_6 = arith.constant 0 : index
    %c0_7 = arith.constant 0 : index
    %11 = vector.load %arg7[%c0_6, %c0_7] : memref<8x512xf32, #tpu.memory_space<vmem>>, vector<8x512xf32>
    tpu.vector_store %arg7[%c0_6, %c0_7], %10 {strides = array<i32>} : memref<8x512xf32, #tpu.memory_space<vmem>>, vector<8x512xf32>,
    %c0_i32_8 = arith.constant 0 : i32
    %12 = arith.cmpi eq, %arg1, %c0_i32_8 : i32
    %13 = arith.extui %12 : i1 to i32
    %c0_i32_9 = arith.constant 0 : i32
    %14 = arith.cmpi ne, %13, %c0_i32_9 : i32
    scf.if %14 {
      %c0_13 = arith.constant 0 : index
      %c0_14 = arith.constant 0 : index
      %20 = vector.load %arg7[%c0_13, %c0_14] : memref<8x512xf32, #tpu.memory_space<vmem>>, vector<8x512xf32>
      %c0_15 = arith.constant 0 : index
      %21 = memref.load %arg2[%c0_15] : memref<2xf32, #tpu.memory_space<smem>>
      %cst_16 = arith.constant 0.00130208337 : f32
      %22 = arith.mulf %21, %cst_16 : f32
      %23 = vector.broadcast %22 : f32 to vector<8x512xf32>
      %24 = arith.mulf %20, %23 : vector<8x512xf32>
      %c0_17 = arith.constant 0 : index
      %c0_18 = arith.constant 0 : index
      %25 = vector.load %arg7[%c0_17, %c0_18] : memref<8x512xf32, #tpu.memory_space<vmem>>, vector<8x512xf32>
      tpu.vector_store %arg7[%c0_17, %c0_18], %24 {strides = array<i32>} : memref<8x512xf32, #tpu.memory_space<vmem>>, vector<8x512xf32>,
    } else {
    }
    %c0_i32_10 = arith.constant 0 : i32
    %15 = arith.cmpi eq, %arg1, %c0_i32_10 : i32
    %c0_i32_11 = arith.constant 0 : i32
    %16 = arith.cmpi eq, %arg0, %c0_i32_11 : i32
    %17 = arith.andi %15, %16 : i1
    %18 = arith.extui %17 : i1 to i32
    %c0_i32_12 = arith.constant 0 : i32
    %19 = arith.cmpi ne, %18, %c0_i32_12 : i32
    scf.if %19 {
      %c0_13 = arith.constant 0 : index
      %c0_14 = arith.constant 0 : index
      %20 = vector.load %arg5[%c0_13, %c0_14] : memref<8x512xf32, #tpu.memory_space<vmem>>, vector<8x512xf32>
      %c0_15 = arith.constant 0 : index
      %c0_16 = arith.constant 0 : index
      %21 = vector.load %arg6[%c0_15, %c0_16] : memref<8x512xf32, #tpu.memory_space<vmem>>, vector<8x512xf32>
      %22 = arith.subf %20, %21 : vector<8x512xf32>
      %23 = arith.mulf %22, %22 : vector<8x512xf32>
      %c0_17 = arith.constant 0 : index
      %c0_18 = arith.constant 0 : index
      %24 = vector.load %arg7[%c0_17, %c0_18] : memref<8x512xf32, #tpu.memory_space<vmem>>, vector<8x512xf32>
      %c1 = arith.constant 1 : index
      %25 = memref.load %arg2[%c1] : memref<2xf32, #tpu.memory_space<smem>>
      %cst_19 = arith.constant 1.250000e-01 : f32
      %26 = arith.mulf %25, %cst_19 : f32
      %27 = vector.shape_cast %23 : vector<8x512xf32> to vector<1x8x512xf32>
      %cst_20 = arith.constant dense<0.000000e+00> : vector<8x512xf32>
      %28 = vector.multi_reduction <add>, %27, %cst_20 [0] : vector<1x8x512xf32> to vector<8x512xf32>
      %29 = vector.broadcast %26 : f32 to vector<8x512xf32>
      %30 = arith.mulf %29, %28 : vector<8x512xf32>
      %31 = arith.addf %24, %30 : vector<8x512xf32>
      %c0_21 = arith.constant 0 : index
      %c0_22 = arith.constant 0 : index
      %32 = vector.load %arg7[%c0_21, %c0_22] : memref<8x512xf32, #tpu.memory_space<vmem>>, vector<8x512xf32>
      tpu.vector_store %arg7[%c0_21, %c0_22], %31 {strides = array<i32>} : memref<8x512xf32, #tpu.memory_space<vmem>>, vector<8x512xf32>,
    } else {
    }
    return
  }
  func.func @transform_0(%arg0: i32, %arg1: i32) -> i32 {
    %c0_i32 = arith.constant 0 : i32
    %c0_i32_0 = arith.constant 0 : i32
    return %c0_i32 : i32
  }
  func.func @transform_1(%arg0: i32, %arg1: i32) -> (i32, i32) {
    %c1_i32 = arith.constant 1 : i32
    %0 = arith.muli %arg0, %c1_i32 : i32
    %1 = arith.addi %0, %arg1 : i32
    %c0_i32 = arith.constant 0 : i32
    %c0_i32_0 = arith.constant 0 : i32
    return %1, %c0_i32 : i32, i32
  }
  func.func @transform_2(%arg0: i32, %arg1: i32) -> (i32, i32) {
    %c1_i32 = arith.constant 1 : i32
    %0 = arith.muli %arg0, %c1_i32 : i32
    %1 = arith.addi %0, %arg1 : i32
    %c0_i32 = arith.constant 0 : i32
    %c0_i32_0 = arith.constant 0 : i32
    return %1, %c0_i32 : i32, i32
  }
  func.func @transform_3(%arg0: i32, %arg1: i32) -> (i32, i32) {
    %c0_i32 = arith.constant 0 : i32
    %c0_i32_0 = arith.constant 0 : i32
    %c0_i32_1 = arith.constant 0 : i32
    return %c0_i32, %c0_i32_0 : i32, i32
  }
  func.func @transform_4(%arg0: i32, %arg1: i32) -> (i32, i32) {
    %c0_i32 = arith.constant 0 : i32
    %c0_i32_0 = arith.constant 0 : i32
    %c0_i32_1 = arith.constant 0 : i32
    return %c0_i32, %c0_i32_0 : i32, i32
  }
  func.func @transform_5(%arg0: i32, %arg1: i32) -> (i32, i32) {
    %c0_i32 = arith.constant 0 : i32
    %c0_i32_0 = arith.constant 0 : i32
    return %arg0, %c0_i32 : i32, i32
  }
}

</mosaic_0001>

<bundles_post_ra>
// kernel: combined_loss.1
= control target key start
LH: loop header
LB: loop body
LE: loop exit
PB: predicated region body
PF: predicated region fallthrough
CT: control target
= control target key end

     0   :  { %10 = vsyncpa [#allocation3], 0  ;;  %s606_s18 = smov 0   ;;  %s608_s19 = smov 0   ;;  %s691_s0 = inlined_call_operand.vmem [shape: f32[2], index: 0, kind: input, shape index: {}]   ;;  %s692_s1 = inlined_call_operand.vmem [shape: f32[16,512], index: 1, kind: input, shape index: {}]   ;;  %s693_s2 = inlined_call_operand.vmem [shape: f32[16,512], index: 2, kind: input, shape index: {}]   ;;  %s694_s3 = inlined_call_operand.vmem [shape: f32[8,512], index: 3, kind: input, shape index: {}]   ;;  %s695_s4 = inlined_call_operand.vmem [shape: f32[8,512], index: 4, kind: input, shape index: {}]   ;;  %s696_s5 = inlined_call_operand.vmem [shape: f32[16,512], index: 5, kind: output, shape index: {}]  }
   0x1   :  { %s610_s20 = smov 0  }
   0x2 LB: > { %s475_s21 = sadd.s32 4294967295, %s573_s20   ;;  %s28_s22 = sadd.s32 1, %s569_s19  ;;  %s573_s20 = sphi %s610_s20, %s16_s20   ;;  %s569_s19 = sphi %s608_s19, %s698_s19   ;;  %s565_s18 = sphi %s606_s18, %s697_s18  }
   0x3   : > { %p30_p0 = scmp.ge.s32.totalorder %s28_s22, 2  ;;  %p477_p1 = scmp.ge.s32.totalorder %s573_s20, 1 }
   0x4   : > { %p178_p2 = scmp.lt.s32.totalorder %s573_s20, 3  ;;  %p504_p4 = scmp.eq.s32.totalorder %s475_s21, 0 }
   0x5   : > { %s700_s22 = smov (%p30_p0, %s28_s22), 0  ;;  %s190_s25 = sshll.u32 %s691_s0, 4  ;;  %s191_s25 = int_to_ptr.vmem [resolvable:$true] %s190_s25 }
   0x6   : > { %p179_p3 = pnand %p477_p1, %p178_p2  ;;  %s575_s26 = smov [#allocation2]  }
   0x8   : > { %p500_p5 = pneg %p179_p3  ;;  %229 = sbr.rel (%p179_p3) target bundleno = 44 (0x2c), region = 40 }
   0xa   : > { %p501_p6 = pnand %p504_p4, %p500_p5 }
   0xc   : > { %503 = dma.vmem_to_smem (!%p501_p6), %s191_s25, 16, %s575_s26, [#allocation3]  }
   0xd   : > { %560 = dma.done.wait (%p504_p4), [#allocation3], 16  }
   0xe   : > { %562 = vsyncadd (%p504_p4), [#allocation3], 4294967280 }
   0xf   : > { %236 = sfence }
  0x10   : > { %p267_p7 = scmp.lt.s32.totalorder %s565_s18, 1  ;;  %p343_p8 = scmp.eq.s32.totalorder %s565_s18, 0 }
  0x11   : > { %s332_s27 = sld [smem:[#allocation2]]  ;;  %v348_v21 = vld [vmem:[%s694_s3] sm:$0xff] (%p343_p8)  ;;  %v349_v24 = vld [vmem:[%s694_s3 + $0x8] sm:$0xff] (%p343_p8)  ;;  %v350_v27 = vld [vmem:[%s694_s3 + $0x10] sm:$0xff] (%p343_p8) }
  0x12   : > { %s268_s28 = scalar_select %p267_p7, %s565_s18, 1  ;;  %v352_v22 = vld [vmem:[%s695_s4] sm:$0xff] (%p343_p8)  ;;  %v353_v25 = vld [vmem:[%s695_s4 + $0x8] sm:$0xff] (%p343_p8)  ;;  %v354_v28 = vld [vmem:[%s695_s4 + $0x10] sm:$0xff] (%p343_p8) }
  0x13   : > { %s489_s23 = sld [smem:[#allocation2 + $0x1]] (%p343_p8)  ;;  %v356_v23 = vsub.f32 (%p343_p8), %v348_v21, %v352_v22  ;;  %v357_v26 = vsub.f32 (%p343_p8), %v349_v24, %v353_v25  ;;  %v358_v29 = vsub.f32 (%p343_p8), %v350_v27, %v354_v28  ;;  %v351_v30 = vld [vmem:[%s694_s3 + $0x18] sm:$0xff] (%p343_p8) }
  0x14   : > { %s492_s29 = sshll.u32 %s268_s28, 5  ;;  %v355_v31 = vld [vmem:[%s695_s4 + $0x18] sm:$0xff] (%p343_p8) }
  0x15   : > { %s271_s7 = scalar_lea.vmem %s692_s1, %s492_s29  ;;  %s278_s10 = scalar_lea.vmem %s693_s2, %s492_s29  ;;  %v359_v32 = vsub.f32 (%p343_p8), %v351_v30, %v355_v31  ;;  %v360_v33 = vmul.f32 (%p343_p8), %v356_v23, %v356_v23  ;;  %v361_v34 = vmul.f32 (%p343_p8), %v357_v26, %v357_v26  ;;  %v362_v35 = vmul.f32 (%p343_p8), %v358_v29, %v358_v29 }
  0x16   : > { %v293_v0 = vld [vmem:[%s271_s7] sm:$0xff]  ;;  %v294_v1 = vld [vmem:[%s271_s7 + $0x8] sm:$0xff]  ;;  %v295_v2 = vld [vmem:[%s271_s7 + $0x10] sm:$0xff]  ;;  %s642_s14 = scalar_lea.vmem %s696_s5, %s492_s29 }
  0x17   : > { %v297_v3 = vld [vmem:[%s278_s10] sm:$0xff]  ;;  %v298_v4 = vld [vmem:[%s278_s10 + $0x8] sm:$0xff]  ;;  %v299_v5 = vld [vmem:[%s278_s10 + $0x10] sm:$0xff]  ;;  %s333_s11 = smul.f32 0.0013020834, %s332_s27  ;;  %v363_v36 = vmul.f32 (%p343_p8), %v359_v32, %v359_v32 }
  0x18   : > { %v301_v6 = vsub.f32 %v293_v0, %v297_v3  ;;  %v302_v7 = vsub.f32 %v294_v1, %v298_v4  ;;  %v303_v8 = vsub.f32 %v295_v2, %v299_v5  ;;  %v296_v9 = vld [vmem:[%s271_s7 + $0x18] sm:$0xff] }
  0x19   : > { %v300_v10 = vld [vmem:[%s278_s10 + $0x18] sm:$0xff]  ;;  %v334_v16 = vstv %s333_s11  ;;  %s369_s10 = smul.f32 (%p343_p8), 0.125, %s489_s23 }
  0x1a   : > { %v304_v11 = vsub.f32 %v296_v9, %v300_v10  ;;  %v305_v12 = vmul.f32 %v301_v6, %v301_v6  ;;  %v306_v13 = vmul.f32 %v302_v7, %v302_v7  ;;  %v307_v14 = vmul.f32 %v303_v8, %v303_v8 }
  0x1b   : > { %v374_v38 = vstv (%p343_p8), %s369_s10 }
  0x1c   : > { %v308_v15 = vmul.f32 %v304_v11, %v304_v11  ;;  %v335_v17 = vmul.f32 %v334_v16, %v305_v12  ;;  %v336_v18 = vmul.f32 %v334_v16, %v306_v13  ;;  %v337_v19 = vmul.f32 %v334_v16, %v307_v14 }
  0x1d   : > { %347 = sbr.rel (!%p343_p8) target bundleno = 44 (0x2c), region = 56  ;;  %v375_v41 = vmul.f32 (%p343_p8), %v374_v38, %v360_v33  ;;  %v376_v42 = vmul.f32 (%p343_p8), %v374_v38, %v361_v34  ;;  %v377_v43 = vmul.f32 (%p343_p8), %v374_v38, %v362_v35  ;;  %v378_v45 = vmul.f32 (%p343_p8), %v374_v38, %v363_v36 }
  0x1e   : > { %v338_v20 = vmul.f32 %v334_v16, %v308_v15  ;;  %339 = vst [vmem:[%s642_s14] sm:$0xff] %v335_v17 }
  0x1f   : > { %340 = vst [vmem:[%s642_s14 + $0x8] sm:$0xff] %v336_v18 }
  0x20   : > { %341 = vst [vmem:[%s642_s14 + $0x10] sm:$0xff] %v337_v19 }
  0x21   : > { %342 = vst [vmem:[%s642_s14 + $0x18] sm:$0xff] %v338_v20 }
  0x25   : > { %v364_v37 = vld [vmem:[%s642_s14] sm:$0xff] }
  0x26   : > { %v365_v39 = vld [vmem:[%s642_s14 + $0x8] sm:$0xff]  ;;  %v379_v46 = vadd.f32 %v375_v41, %v364_v37 }
  0x27   : > { %v366_v40 = vld [vmem:[%s642_s14 + $0x10] sm:$0xff]  ;;  %v380_v47 = vadd.f32 %v376_v42, %v365_v39 }
  0x28   : > { %v367_v44 = vld [vmem:[%s642_s14 + $0x18] sm:$0xff]  ;;  %v381_v48 = vadd.f32 %v377_v43, %v366_v40  ;;  %383 = vst [vmem:[%s642_s14] sm:$0xff] %v379_v46 }
  0x29   : > { %v382_v49 = vadd.f32 %v378_v45, %v367_v44  ;;  %384 = vst [vmem:[%s642_s14 + $0x8] sm:$0xff] %v380_v47 }
  0x2a   : > { %385 = vst [vmem:[%s642_s14 + $0x10] sm:$0xff] %v381_v48 }
  0x2b   : > { %386 = vst [vmem:[%s642_s14 + $0x18] sm:$0xff] %v382_v49 }
  0x2c PF: > { %s16_s20 = sadd.s32 1, %s573_s20   ;;  %s697_s18 = smov %s569_s19 }
  0x2d   : > { %p13_p9 = scmp.ge.s32.totalorder %s16_s20, 4   ;;  %s698_s19 = smov %s700_s22 }
  0x2f   :  { %15 = sbr.rel (!%p13_p9) target bundleno = 2 (0x2), region = 90 }
  0x34   :  { %408 = vsyncpa [#allocation3], 1 }
  0x35   :  { %410 = vsyncpa [#allocation3 + $0x1], 1 }

</bundles_post_ra>
